<compile_context>
chip_gen: v5e
topology: v5e:2x2
jax: 0.10.0
libtpu: 0.0.40
codegen_flags: <defaults>
</compile_context>

<pallas_src>
import jax
import jax.numpy as jnp
from jax.experimental import pallas as pl
from jax.experimental.pallas import tpu as pltpu

_MIB = 1024 * 1024


def ffnn_kernel(x_ref, wh_ref, bh_ref, wo_ref, bo_ref, out_ref):
    # h1 = signal @ Wh + bh ; h2 = h1 @ Wh + bh (same layer twice) ; out = h2 @ Wo + bo
    x = x_ref[...]          # bf16 — do NOT upcast before the MXU
    wh = wh_ref[...]        # bf16, single-buffered resident weight
    bh = bh_ref[...]        # f32 bias: elementwise adds stay f32 (v5e has no bf16 VPU)

    h1 = jnp.dot(x, wh, preferred_element_type=jnp.float32) + bh
    h2 = jnp.dot(h1.astype(jnp.bfloat16), wh, preferred_element_type=jnp.float32) + bh
    out = (
        jnp.dot(h2.astype(jnp.bfloat16), wo_ref[...], preferred_element_type=jnp.float32)
        + bo_ref[...]
    )
    out_ref[...] = out.astype(out_ref.dtype)   # bf16 store: lane-dense, half the HBM bytes


def _device_kind():
    try:
        return jax.devices()[0].device_kind.lower()
    except Exception:
        return ""


def _vmem_limit_bytes():
    """Generation-aware scoped-VMEM limit: leave headroom on v7x, raise on v5e/v6e."""
    try:
        phys = pltpu.get_tpu_info().vmem_capacity_bytes
    except Exception:
        phys = 128 * _MIB
    if phys <= 64 * _MIB:          # v7x: 64 MiB physical per TC — keep scratch headroom
        return 48 * _MIB
    return 100 * _MIB              # v5e / v6e: 128 MiB physical


def _pick_batch_tile(B, tb):
    if tb is None:
        # 256-wide MXU on v6e/v7x -> tb=256 fills M and halves grid steps;
        # keep 128 on v5e (128-wide MXU, single vst slot -> avoid f32 spill pressure).
        tb = 128 if "v5" in _device_kind() else 256
    tb = min(tb, B)
    # Guarantee >= 2 grid steps for medium batches so the "parallel" axis can shard
    # across both v7x TensorCores (one extra ~0.35 us step is cheap vs an idle TC).
    if B >= 32 and B // tb < 2 and B % 2 == 0:
        tb = B // 2
    return tb


def ffnn_forward(x, wh, bh, wo, bo, *, tb=None):
    """x: (B, H); wh: (H, H); bh: (1, H); wo: (H, C); bo: (1, C) -> (B, C) f32 logits."""
    B, H = x.shape
    C = wo.shape[1]

    tb = _pick_batch_tile(B, tb)
    assert B % tb == 0, "batch must be divisible by the batch tile"
    # bf16 packs 16 sublanes per vreg — keep the tile at least 16 rows when possible.
    assert tb >= 16 or tb == B

    # Lane-dense output: pad the classifier to a multiple of 128 lanes (zeros are inert).
    c_pad = max(128, ((C + 127) // 128) * 128)
    wo_p = jnp.zeros((H, c_pad), jnp.bfloat16).at[:, :C].set(wo.astype(jnp.bfloat16))
    bo_p = jnp.zeros((1, c_pad), jnp.float32).at[:, :C].set(bo.astype(jnp.float32))

    x_bf = x.astype(jnp.bfloat16)
    wh_bf = wh.astype(jnp.bfloat16)
    bh_f32 = bh.astype(jnp.float32)

    # Constant-index (weight/bias) inputs: single-buffered — double-buffering a
    # lambda i: (0, 0) block buys nothing and doubles its VMEM footprint.
    resident = dict(pipeline_mode=pl.Buffered(1))

    # TODO(synk): for H >~ 4K (v7x) / ~8K (v5e/v6e) the resident (H, H) bf16 weight no
    # longer fits VMEM even single-buffered; switch to keeping h1/h2 in a (tb, H) VMEM
    # scratch and tiling wh over its output-feature dim with an inner pltpu.emit_pipeline
    # (trailing "arbitrary" axis + f32 accumulator) instead of a whole-weight block.
    out_p = pl.pallas_call(
        ffnn_kernel,
        out_shape=jax.ShapeDtypeStruct((B, c_pad), jnp.bfloat16),
        grid_spec=pltpu.PrefetchScalarGridSpec(
            num_scalar_prefetch=0,
            grid=(B // tb,),
            in_specs=[
                pl.BlockSpec((tb, H), lambda i: (i, 0)),                  # activations (tiled)
                pl.BlockSpec((H, H), lambda i: (0, 0), **resident),       # shared hidden weight
                pl.BlockSpec((1, H), lambda i: (0, 0), **resident),       # hidden bias (f32)
                pl.BlockSpec((H, c_pad), lambda i: (0, 0), **resident),   # output weight (padded)
                pl.BlockSpec((1, c_pad), lambda i: (0, 0), **resident),   # output bias (padded)
            ],
            out_specs=pl.BlockSpec((tb, c_pad), lambda i: (i, 0)),
        ),
        compiler_params=pltpu.CompilerParams(
            dimension_semantics=("parallel",),          # shards batch across TCs on v7x
            vmem_limit_bytes=_vmem_limit_bytes(),       # generation-aware headroom
        ),
    )(x_bf, wh_bf, bh_f32, wo_p, bo_p)

    # Slice the real logits and present them as f32 (tiny: B x C elements).
    return out_p[:, :C].astype(jnp.float32)


if __name__ == "__main__":
    # Small shapes consistent with the module (hidden_size scaled down, class_size=2).
    B, H, C = 16, 256, 2

    key = jax.random.PRNGKey(0)
    kx, kwh, kbh, kwo, kbo = jax.random.split(key, 5)

    # Deterministic PyTorch-style init: U(-1/sqrt(fan_in), 1/sqrt(fan_in)).
    bound_h = 1.0 / (H ** 0.5)
    wh = jax.random.uniform(kwh, (H, H), jnp.float32, -bound_h, bound_h)  # (in, out)
    bh = jax.random.uniform(kbh, (1, H), jnp.float32, -bound_h, bound_h)
    wo = jax.random.uniform(kwo, (H, C), jnp.float32, -bound_h, bound_h)  # (in, out)
    bo = jax.random.uniform(kbo, (1, C), jnp.float32, -bound_h, bound_h)

    x = jax.random.normal(kx, (B, H), jnp.float32)

    out = jax.block_until_ready(ffnn_forward(x, wh, bh, wo, bo))

    # Pure-JAX reference doing the same bf16-operand / f32-accumulate arithmetic.
    x_bf = x.astype(jnp.bfloat16)
    wh_bf = wh.astype(jnp.bfloat16)
    wo_bf = wo.astype(jnp.bfloat16)
    h1 = jnp.dot(x_bf, wh_bf, preferred_element_type=jnp.float32) + bh
    h2 = jnp.dot(h1.astype(jnp.bfloat16), wh_bf, preferred_element_type=jnp.float32) + bh
    ref = jnp.dot(h2.astype(jnp.bfloat16), wo_bf, preferred_element_type=jnp.float32) + bo

    assert out.shape == (B, C)
    assert jnp.allclose(out, ref, atol=2e-2, rtol=2e-2)

    print("KERNEL_OK")
</pallas_src>

<mosaic_0001>
module attributes {stable_mosaic.version = 11 : i64} {
  func.func @ffnn_kernel(%arg0: i32, %arg1: memref<16x256xbf16, #tpu.memory_space<vmem>>, %arg2: memref<256x256xbf16, #tpu.memory_space<vmem>>, %arg3: memref<1x256xf32, #tpu.memory_space<vmem>>, %arg4: memref<256x128xbf16, #tpu.memory_space<vmem>>, %arg5: memref<1x128xf32, #tpu.memory_space<vmem>>, %arg6: memref<16x128xbf16, #tpu.memory_space<vmem>>) attributes {dimension_semantics = [#tpu.dimension_semantics<parallel>], iteration_bounds = array<i64: 1>, scalar_prefetch = 0 : i64, scratch_operands = 0 : i64, tpu.core_type = #tpu.core_type<tc>, window_params = [{transform_indices = @transform_0, window_bounds = array<i64: 16, 256>}, {pipeline_mode = #tpu.pipeline_mode<synchronous>, transform_indices = @transform_1, window_bounds = array<i64: 256, 256>}, {pipeline_mode = #tpu.pipeline_mode<synchronous>, transform_indices = @transform_2, window_bounds = array<i64: 1, 256>}, {pipeline_mode = #tpu.pipeline_mode<synchronous>, transform_indices = @transform_3, window_bounds = array<i64: 256, 128>}, {pipeline_mode = #tpu.pipeline_mode<synchronous>, transform_indices = @transform_4, window_bounds = array<i64: 1, 128>}, {transform_indices = @transform_5, window_bounds = array<i64: 16, 128>}]} {
    %c0 = arith.constant 0 : index
    %c0_0 = arith.constant 0 : index
    %0 = vector.load %arg1[%c0, %c0_0] : memref<16x256xbf16, #tpu.memory_space<vmem>>, vector<16x256xbf16>
    %c0_1 = arith.constant 0 : index
    %c0_2 = arith.constant 0 : index
    %1 = vector.load %arg2[%c0_1, %c0_2] : memref<256x256xbf16, #tpu.memory_space<vmem>>, vector<256x256xbf16>
    %c0_3 = arith.constant 0 : index
    %c0_4 = arith.constant 0 : index
    %2 = vector.load %arg3[%c0_3, %c0_4] : memref<1x256xf32, #tpu.memory_space<vmem>>, vector<1x256xf32>
    %cst = arith.constant dense<0.000000e+00> : vector<16x256xf32>
    %3 = tpu.matmul %0, %1, %cst {dimension_numbers = #tpu.dot_dimension_numbers<[1], [0], [0], [1], [0, 0, 1, 1], [], []>} : vector<16x256xbf16>, vector<256x256xbf16>, vector<16x256xf32> -> vector<16x256xf32>
    %4 = vector.broadcast %2 : vector<1x256xf32> to vector<16x256xf32>
    %5 = arith.addf %3, %4 : vector<16x256xf32>
    %6 = arith.truncf %5 : vector<16x256xf32> to vector<16x256xbf16>
    %cst_5 = arith.constant dense<0.000000e+00> : vector<16x256xf32>
    %7 = tpu.matmul %6, %1, %cst_5 {dimension_numbers = #tpu.dot_dimension_numbers<[1], [0], [0], [1], [0, 0, 1, 1], [], []>} : vector<16x256xbf16>, vector<256x256xbf16>, vector<16x256xf32> -> vector<16x256xf32>
    %8 = vector.broadcast %2 : vector<1x256xf32> to vector<16x256xf32>
    %9 = arith.addf %7, %8 : vector<16x256xf32>
    %10 = arith.truncf %9 : vector<16x256xf32> to vector<16x256xbf16>
    %c0_6 = arith.constant 0 : index
    %c0_7 = arith.constant 0 : index
    %11 = vector.load %arg4[%c0_6, %c0_7] : memref<256x128xbf16, #tpu.memory_space<vmem>>, vector<256x128xbf16>
    %cst_8 = arith.constant dense<0.000000e+00> : vector<16x128xf32>
    %12 = tpu.matmul %10, %11, %cst_8 {dimension_numbers = #tpu.dot_dimension_numbers<[1], [0], [0], [1], [0, 0, 1, 1], [], []>} : vector<16x256xbf16>, vector<256x128xbf16>, vector<16x128xf32> -> vector<16x128xf32>
    %c0_9 = arith.constant 0 : index
    %c0_10 = arith.constant 0 : index
    %13 = vector.load %arg5[%c0_9, %c0_10] : memref<1x128xf32, #tpu.memory_space<vmem>>, vector<1x128xf32>
    %14 = vector.broadcast %13 : vector<1x128xf32> to vector<16x128xf32>
    %15 = arith.addf %12, %14 : vector<16x128xf32>
    %16 = arith.truncf %15 : vector<16x128xf32> to vector<16x128xbf16>
    %c0_11 = arith.constant 0 : index
    %c0_12 = arith.constant 0 : index
    %17 = vector.load %arg6[%c0_11, %c0_12] : memref<16x128xbf16, #tpu.memory_space<vmem>>, vector<16x128xbf16>
    tpu.vector_store %arg6[%c0_11, %c0_12], %16 {strides = array<i32>} : memref<16x128xbf16, #tpu.memory_space<vmem>>, vector<16x128xbf16>,
    return
  }
  func.func @transform_0(%arg0: i32) -> (i32, i32) {
    %c0_i32 = arith.constant 0 : i32
    %c0_i32_0 = arith.constant 0 : i32
    return %arg0, %c0_i32 : i32, i32
  }
  func.func @transform_1(%arg0: i32) -> (i32, i32) {
    %c0_i32 = arith.constant 0 : i32
    %c0_i32_0 = arith.constant 0 : i32
    %c0_i32_1 = arith.constant 0 : i32
    return %c0_i32, %c0_i32_0 : i32, i32
  }
  func.func @transform_2(%arg0: i32) -> (i32, i32) {
    %c0_i32 = arith.constant 0 : i32
    %c0_i32_0 = arith.constant 0 : i32
    %c0_i32_1 = arith.constant 0 : i32
    return %c0_i32, %c0_i32_0 : i32, i32
  }
  func.func @transform_3(%arg0: i32) -> (i32, i32) {
    %c0_i32 = arith.constant 0 : i32
    %c0_i32_0 = arith.constant 0 : i32
    %c0_i32_1 = arith.constant 0 : i32
    return %c0_i32, %c0_i32_0 : i32, i32
  }
  func.func @transform_4(%arg0: i32) -> (i32, i32) {
    %c0_i32 = arith.constant 0 : i32
    %c0_i32_0 = arith.constant 0 : i32
    %c0_i32_1 = arith.constant 0 : i32
    return %c0_i32, %c0_i32_0 : i32, i32
  }
  func.func @transform_5(%arg0: i32) -> (i32, i32) {
    %c0_i32 = arith.constant 0 : i32
    %c0_i32_0 = arith.constant 0 : i32
    return %arg0, %c0_i32 : i32, i32
  }
}

</mosaic_0001>

<bundles_post_ra>
// kernel: tpu_custom_call.1
= control target key start
LH: loop header
LB: loop body
LE: loop exit
PB: predicated region body
PF: predicated region fallthrough
CT: control target
= control target key end

     0   :  { %10 = vsyncpa [#allocation3], 0  ;;  %s1145_s0 = inlined_call_operand.hbm [shape: bf16[16,256], index: 0, kind: input, shape index: {}]   ;;  %s1146_s1 = inlined_call_operand.hbm [shape: bf16[256,256], index: 1, kind: input, shape index: {}]   ;;  %s1147_s2 = inlined_call_operand.hbm [shape: f32[1,256], index: 2, kind: input, shape index: {}]   ;;  %s1148_s3 = inlined_call_operand.hbm [shape: bf16[256,128], index: 3, kind: input, shape index: {}]   ;;  %s1149_s4 = inlined_call_operand.vmem [shape: f32[1,128], index: 4, kind: input, shape index: {}]   ;;  %s1150_s5 = inlined_call_operand.hbm [shape: bf16[16,128], index: 5, kind: output, shape index: {}]  }
   0x1   :  { %11 = vsyncpa [#allocation6], 0 }
   0x2   :  { %12 = vsyncpa [#allocation9], 0 }
   0x3   :  { %13 = vsyncpa [#allocation4], 0  ;;  %s31_s20 = sshll.u32 %s1146_s1, 4  ;;  %s986_s21 = smov [#allocation5]   ;;  %s32_s20 = int_to_ptr.hbm [resolvable:$true] %s31_s20 }
   0x4   :  { %s33_s22 = sshll.u32 %s986_s21, 4  ;;  %s18_s25 = sshll.u32 %s1145_s0, 4  ;;  %s34_s22 = int_to_ptr.vmem [resolvable:$true] %s33_s22  ;;  %s19_s25 = int_to_ptr.hbm [resolvable:$true] %s18_s25 }
   0x5   :  { %s987_s26 = smov 128   ;;  %s988_s27 = smov 8  }
   0x6   :  { %39 = dma.hbm_to_vmem [thread:$0]  %s32_s20, 4096, %s34_s22, [#allocation6], %s987_s26, %s987_s26, %s988_s27  }
   0x7   :  { %s989_s28 = smov [#allocation2]   ;;  %s45_s7 = sshll.u32 %s1147_s2, 4  ;;  %s46_s7 = int_to_ptr.hbm [resolvable:$true] %s45_s7 }
   0x8   :  { %s20_s29 = sshll.u32 %s989_s28, 4  ;;  %s55_s9 = sshll.u32 %s1148_s3, 4  ;;  %s21_s29 = int_to_ptr.vmem [resolvable:$true] %s20_s29  ;;  %s56_s9 = int_to_ptr.hbm [resolvable:$true] %s55_s9 }
   0x9   :  { %26 = dma.hbm_to_vmem [thread:$0]  %s19_s25, 256, %s21_s29, [#allocation3], %s987_s26, %s987_s26, %s988_s27  }
   0xa   :  { %s990_s10 = smov [#allocation7]   ;;  %s991_s0 = smov [#allocation8]  }
   0xb   :  { %s47_s11 = sshll.u32 %s990_s10, 4  ;;  %s57_s12 = sshll.u32 %s991_s0, 4  ;;  %s48_s11 = int_to_ptr.vmem [resolvable:$true] %s47_s11  ;;  %s58_s12 = int_to_ptr.vmem [resolvable:$true] %s57_s12 }
   0xc   :  { %50 = dma.hbm_to_vmem [thread:$0]  %s46_s7, 32, %s48_s11, [#allocation6]  }
   0xd   :  { %s992_s13 = smov 64   ;;  %s993_s14 = smov 4  }
   0xe   :  { %63 = dma.hbm_to_vmem [thread:$0]  %s56_s9, 2048, %s58_s12, [#allocation9], %s992_s13, %s992_s13, %s993_s14  }
   0xf   :  { %978 = dma.done.wait [#allocation3], 256  }
  0x10   :  { %979 = vsyncadd [#allocation3], 4294967040 }
  0x11   :  { %980 = dma.done.wait [#allocation6], 4128  }
  0x12   :  { %981 = vsyncadd [#allocation6], 4294963168 }
  0x13   :  { %982 = dma.done.wait [#allocation9], 2048  }
  0x14   :  { %983 = vsyncadd [#allocation9], 4294965248  ;;  %v659_v0 = vld [vmem:[#allocation5 + $0x70] sm:$0xf]  ;;  %v810_v1 = vld [vmem:[#allocation5 + $0x74] sm:$0xf0] }
  0x15   :  { %v723_v2 = vld [vmem:[#allocation5 + $0xf0] sm:$0xf]  ;;  %v1040_v3 = vor.u32 %v810_v1, %v659_v0  ;;  %v826_v4 = vld [vmem:[#allocation5 + $0xf4] sm:$0xf0]  ;;  %v809_v5 = vld [vmem:[#allocation5 + $0x74] sm:$0xf] }
  0x16   :  { %v661_v6 = vld [vmem:[#allocation5 + $0x78] sm:$0xf0]  ;;  %v1042_v7 = vor.u32 %v826_v4, %v723_v2  ;;  %v825_v9 = vld [vmem:[#allocation5 + $0xf4] sm:$0xf]  ;;  %v651_v11 = vld [vmem:[#allocation5 + $0x60] sm:$0xf] }
  0x17   :  { %v1044_v8 = vor.u32 %v809_v5, %v661_v6  ;;  %v725_v10 = vld [vmem:[#allocation5 + $0xf8] sm:$0xf0]  ;;  %292 = vmatpush.bf16.msra.mxu0 %v1040_v3  ;;  %v808_v13 = vld [vmem:[#allocation5 + $0x64] sm:$0xf0]  ;;  %v715_v14 = vld [vmem:[#allocation5 + $0xe0] sm:$0xf] }
  0x18   :  { %v1047_v12 = vor.u32 %v825_v9, %v725_v10  ;;  %v824_v15 = vld [vmem:[#allocation5 + $0xe4] sm:$0xf0]  ;;  %306 = vmatpush.bf16.msra.mxu1 %v1042_v7  ;;  %v1051_v16 = vor.u32 %v808_v13, %v651_v11  ;;  %v807_v18 = vld [vmem:[#allocation5 + $0x64] sm:$0xf]  ;;  %v653_v19 = vld [vmem:[#allocation5 + $0x68] sm:$0xf0] }
  0x19   :  { %320 = vmatpush.bf16.msra.mxu2 %v1044_v8  ;;  %v1053_v17 = vor.u32 %v824_v15, %v715_v14  ;;  %v823_v20 = vld [vmem:[#allocation5 + $0xe4] sm:$0xf]  ;;  %v1056_v21 = vor.u32 %v807_v18, %v653_v19  ;;  %v717_v22 = vld [vmem:[#allocation5 + $0xe8] sm:$0xf0]  ;;  %v643_v23 = vld [vmem:[#allocation5 + $0x50] sm:$0xf] }
  0x1a   :  { %334 = vmatpush.bf16.msra.mxu3 %v1047_v12  ;;  %v806_v24 = vld [vmem:[#allocation5 + $0x54] sm:$0xf0]  ;;  %v1058_v25 = vor.u32 %v823_v20, %v717_v22  ;;  %v707_v26 = vld [vmem:[#allocation5 + $0xd0] sm:$0xf]  ;;  %v805_v28 = vld [vmem:[#allocation5 + $0x54] sm:$0xf] }
  0x1b   :  { %v822_v27 = vld [vmem:[#allocation5 + $0xd4] sm:$0xf0]  ;;  %293 = vmatpush.bf16.msra.mxu0 %v1051_v16  ;;  %v1061_v29 = vor.u32 %v806_v24, %v643_v23  ;;  %v645_v30 = vld [vmem:[#allocation5 + $0x58] sm:$0xf0]  ;;  %v821_v31 = vld [vmem:[#allocation5 + $0xd4] sm:$0xf] }
  0x1c   :  { %v709_v32 = vld [vmem:[#allocation5 + $0xd8] sm:$0xf0]  ;;  %307 = vmatpush.bf16.msra.mxu1 %v1053_v17  ;;  %v1065_v33 = vor.u32 %v822_v27, %v707_v26  ;;  %v1067_v34 = vor.u32 %v805_v28, %v645_v30  ;;  %v635_v35 = vld [vmem:[#allocation5 + $0x40] sm:$0xf]  ;;  %v804_v36 = vld [vmem:[#allocation5 + $0x44] sm:$0xf0] }
  0x1d   :  { %321 = vmatpush.bf16.msra.mxu2 %v1056_v21  ;;  %v699_v37 = vld [vmem:[#allocation5 + $0xc0] sm:$0xf]  ;;  %v1070_v38 = vor.u32 %v821_v31, %v709_v32  ;;  %v820_v39 = vld [vmem:[#allocation5 + $0xc4] sm:$0xf0]  ;;  %v803_v40 = vld [vmem:[#allocation5 + $0x44] sm:$0xf]  ;;  %v1073_v44 = vor.u32 %v804_v36, %v635_v35 }
  0x1e   :  { %335 = vmatpush.bf16.msra.mxu3 %v1058_v25  ;;  %v637_v41 = vld [vmem:[#allocation5 + $0x48] sm:$0xf0]  ;;  %v819_v42 = vld [vmem:[#allocation5 + $0xc4] sm:$0xf]  ;;  %v1077_v45 = vor.u32 %v820_v39, %v699_v37  ;;  %v627_v47 = vld [vmem:[#allocation5 + $0x30] sm:$0xf] }
  0x1f   :  { %v701_v43 = vld [vmem:[#allocation5 + $0xc8] sm:$0xf0]  ;;  %294 = vmatpush.bf16.msra.mxu0 %v1061_v29  ;;  %v1079_v46 = vor.u32 %v803_v40, %v637_v41  ;;  %v802_v48 = vld [vmem:[#allocation5 + $0x34] sm:$0xf0]  ;;  %v691_v49 = vld [vmem:[#allocation5 + $0xb0] sm:$0xf] }
  0x20   :  { %308 = vmatpush.bf16.msra.mxu1 %v1065_v33  ;;  %v1082_v50 = vor.u32 %v819_v42, %v701_v43  ;;  %v818_v51 = vld [vmem:[#allocation5 + $0xb4] sm:$0xf0]  ;;  %v801_v52 = vld [vmem:[#allocation5 + $0x34] sm:$0xf]  ;;  %v629_v53 = vld [vmem:[#allocation5 + $0x38] sm:$0xf0]  ;;  %v1085_v56 = vor.u32 %v802_v48, %v627_v47 }
  0x21   :  { %322 = vmatpush.bf16.msra.mxu2 %v1067_v34  ;;  %v817_v54 = vld [vmem:[#allocation5 + $0xb4] sm:$0xf]  ;;  %v693_v55 = vld [vmem:[#allocation5 + $0xb8] sm:$0xf0]  ;;  %v1089_v57 = vor.u32 %v818_v51, %v691_v49  ;;  %v1091_v58 = vor.u32 %v801_v52, %v629_v53  ;;  %v619_v59 = vld [vmem:[#allocation5 + $0x20] sm:$0xf] }
  0x22   :  { %336 = vmatpush.bf16.msra.mxu3 %v1070_v38  ;;  %v800_v60 = vld [vmem:[#allocation5 + $0x24] sm:$0xf0]  ;;  %v683_v61 = vld [vmem:[#allocation5 + $0xa0] sm:$0xf]  ;;  %v1094_v62 = vor.u32 %v817_v54, %v693_v55  ;;  %v799_v0 = vld [vmem:[#allocation5 + $0x24] sm:$0xf] }
  0x23   :  { %295 = vmatpush.bf16.msra.mxu0 %v1073_v44  ;;  %v816_v63 = vld [vmem:[#allocation5 + $0xa4] sm:$0xf0]  ;;  %v621_v1 = vld [vmem:[#allocation5 + $0x28] sm:$0xf0]  ;;  %v815_v2 = vld [vmem:[#allocation5 + $0xa4] sm:$0xf]  ;;  %v1097_v5 = vor.u32 %v800_v60, %v619_v59 }
  0x24   :  { %309 = vmatpush.bf16.msra.mxu1 %v1077_v45  ;;  %v685_v4 = vld [vmem:[#allocation5 + $0xa8] sm:$0xf0]  ;;  %v1101_v6 = vor.u32 %v816_v63, %v683_v61  ;;  %v1103_v9 = vor.u32 %v799_v0, %v621_v1  ;;  %v611_v10 = vld [vmem:[#allocation5 + $0x10] sm:$0xf]  ;;  %v798_v11 = vld [vmem:[#allocation5 + $0x14] sm:$0xf0] }
  0x25   :  { %323 = vmatpush.bf16.msra.mxu2 %v1079_v46  ;;  %v675_v13 = vld [vmem:[#allocation5 + $0x90] sm:$0xf]  ;;  %v1106_v14 = vor.u32 %v815_v2, %v685_v4  ;;  %v814_v15 = vld [vmem:[#allocation5 + $0x94] sm:$0xf0]  ;;  %v797_v18 = vld [vmem:[#allocation5 + $0x14] sm:$0xf]  ;;  %v612_v23 = vor.u32 %v798_v11, %v611_v10 }
  0x26   :  { %337 = vmatpush.bf16.msra.mxu3 %v1082_v50  ;;  %v613_v19 = vld [vmem:[#allocation5 + $0x18] sm:$0xf0]  ;;  %v813_v20 = vld [vmem:[#allocation5 + $0x94] sm:$0xf]  ;;  %v676_v24 = vor.u32 %v814_v15, %v675_v13  ;;  %v603_v27 = vld [vmem:[#allocation5] sm:$0xf] }
  0x27   :  { %296 = vmatpush.bf16.msra.mxu0 %v1085_v56  ;;  %v677_v22 = vld [vmem:[#allocation5 + $0x98] sm:$0xf0]  ;;  %v616_v26 = vor.u32 %v797_v18, %v613_v19  ;;  %v796_v28 = vld [vmem:[#allocation5 + $0x4] sm:$0xf0]  ;;  %v667_v30 = vld [vmem:[#allocation5 + $0x80] sm:$0xf] }
  0x28   :  { %310 = vmatpush.bf16.msra.mxu1 %v1089_v57  ;;  %v680_v31 = vor.u32 %v813_v20, %v677_v22  ;;  %v812_v32 = vld [vmem:[#allocation5 + $0x84] sm:$0xf0]  ;;  %v795_v35 = vld [vmem:[#allocation5 + $0x4] sm:$0xf]  ;;  %v605_v36 = vld [vmem:[#allocation5 + $0x8] sm:$0xf0]  ;;  %v604_v40 = vor.u32 %v796_v28, %v603_v27 }
  0x29   :  { %324 = vmatpush.bf16.msra.mxu2 %v1091_v58  ;;  %v811_v37 = vld [vmem:[#allocation5 + $0x84] sm:$0xf]  ;;  %v669_v39 = vld [vmem:[#allocation5 + $0x88] sm:$0xf0]  ;;  %v595_v41 = vld [vmem:[#allocation2] sm:$0xf]  ;;  %v668_v43 = vor.u32 %v812_v32, %v667_v30  ;;  %v608_v47 = vor.u32 %v795_v35, %v605_v36 }
  0x2a   :  { %338 = vmatpush.bf16.msra.mxu3 %v1094_v62  ;;  %v794_v42 = vld [vmem:[#allocation2 + $0x4] sm:$0xf0]  ;;  %v793_v48 = vld [vmem:[#allocation2 + $0x4] sm:$0xf]  ;;  %v597_v49 = vld [vmem:[#allocation2 + $0x8] sm:$0xf0]  ;;  %v672_v51 = vor.u32 %v811_v37, %v669_v39 }
  0x2b   :  { %297 = vmatpush.bf16.msra.mxu0 %v1097_v5  ;;  %v596_v52 = vor.u32 %v794_v42, %v595_v41  ;;  %v600_v53 = vor.u32 %v793_v48, %v597_v49  ;;  %v831_v0 = vld [vmem:[#allocation8 + $0x20] sm:$0xff]  ;;  %v840_v1 = vld [vmem:[#allocation8 + $0x68] sm:$0xff]  ;;  %v830_v2 = vld [vmem:[#allocation8 + $0x18] sm:$0xff]  ;;  %s994_s15 = smov [#allocation10]   ;;  %s578_s19 = sshll.u32 %s1150_s5, 4  ;;  %s579_s19 = int_to_ptr.hbm [resolvable:$true] %s578_s19 }
  0x2c   :  { %311 = vmatpush.bf16.msra.mxu1 %v1101_v6  ;;  %v839_v4 = vld [vmem:[#allocation8 + $0x60] sm:$0xff]  ;;  %v837_v10 = vld [vmem:[#allocation8 + $0x50] sm:$0xff]  ;;  %v836_v13 = vld [vmem:[#allocation8 + $0x48] sm:$0xff]  ;;  %s576_s16 = sshll.u32 %s994_s15, 4  ;;  %s577_s16 = int_to_ptr.vmem [resolvable:$true] %s576_s16 }
  0x2d   :  { %325 = vmatpush.bf16.msra.mxu2 %v1103_v9  ;;  %v827_v11 = vld [vmem:[#allocation8] sm:$0xff] }
  0x2e   :  { %339 = vmatpush.bf16.msra.mxu3 %v1106_v14 }
  0x2f   :  { %298 = vmatpush.bf16.msra.mxu0 %v612_v23 }
  0x30   :  { %312 = vmatpush.bf16.msra.mxu1 %v676_v24 }
  0x31   :  { %326 = vmatpush.bf16.msra.mxu2 %v616_v26 }
  0x32   :  { %340 = vmatpush.bf16.msra.mxu3 %v680_v31 }
  0x33   :  { %299 = vmatpush.bf16.msra.mxu0 %v604_v40 }
  0x34   :  { %313 = vmatpush.bf16.msra.mxu1 %v668_v43 }
  0x35   :  { %327 = vmatpush.bf16.msra.mxu2 %v608_v47 }
  0x36   :  { %341 = vmatpush.bf16.msra.mxu3 %v672_v51  ;;  %300 = vmatmul.bf16.vlgmr.msra.gmra.mxu0 %v596_v52 }
  0x37   :  { %350 = vmatpush.bf16.msrb.mxu0 %v1040_v3  ;;  %314 = vmatmul.bf16.vlgmr.msra.gmra.mxu1 %v600_v53  ;;  %v834_v3 = vld [vmem:[#allocation8 + $0x38] sm:$0xff] }
  0x38   :  { %328 = vmatmul.bf16.vlgmr.msra.gmra.mxu2 %v596_v52  ;;  %364 = vmatpush.bf16.msrb.mxu1 %v1042_v7  ;;  %v842_v7 = vld [vmem:[#allocation8 + $0x78] sm:$0xff] }
  0x39   :  { %378 = vmatpush.bf16.msrb.mxu2 %v1044_v8  ;;  %342 = vmatmul.bf16.vlgmr.msra.gmra.mxu3 %v600_v53  ;;  %v833_v8 = vld [vmem:[#allocation8 + $0x30] sm:$0xff] }
  0x3a   :  { %392 = vmatpush.bf16.msrb.mxu3 %v1047_v12  ;;  %v841_v12 = vld [vmem:[#allocation8 + $0x70] sm:$0xff] }
  0x3b   :  { %351 = vmatpush.bf16.msrb.mxu0 %v1051_v16  ;;  %v832_v16 = vld [vmem:[#allocation8 + $0x28] sm:$0xff] }
  0x3c   :  { %365 = vmatpush.bf16.msrb.mxu1 %v1053_v17  ;;  %v116_v17 = vld [vmem:[#allocation7] sm:$0x3] }
  0x3d   :  { %379 = vmatpush.bf16.msrb.mxu2 %v1056_v21 }
  0x3e   :  { %393 = vmatpush.bf16.msrb.mxu3 %v1058_v25 }
  0x3f   :  { %352 = vmatpush.bf16.msrb.mxu0 %v1061_v29  ;;  %v118_v29 = vperm.slane %v116_v17, 0 }
  0x40   :  { %366 = vmatpush.bf16.msrb.mxu1 %v1065_v33 }
  0x41   :  { %380 = vmatpush.bf16.msrb.mxu2 %v1067_v34 }
  0x42   :  { %394 = vmatpush.bf16.msrb.mxu3 %v1070_v38 }
  0x43   :  { %353 = vmatpush.bf16.msrb.mxu0 %v1073_v44 }
  0x44   :  { %367 = vmatpush.bf16.msrb.mxu1 %v1077_v45 }
  0x45   :  { %381 = vmatpush.bf16.msrb.mxu2 %v1079_v46  ;;  %v119_v46 = vperm.slane %v116_v17, 1 }
  0x46   :  { %395 = vmatpush.bf16.msrb.mxu3 %v1082_v50 }
  0x47   :  { %354 = vmatpush.bf16.msrb.mxu0 %v1085_v56 }
  0x48   :  { %368 = vmatpush.bf16.msrb.mxu1 %v1089_v57 }
  0x49   :  { %382 = vmatpush.bf16.msrb.mxu2 %v1091_v58 }
  0x4a   :  { %396 = vmatpush.bf16.msrb.mxu3 %v1094_v62 }
  0x4b   :  { %355 = vmatpush.bf16.msrb.mxu0 %v1097_v5  ;;  %v829_v5 = vld [vmem:[#allocation8 + $0x10] sm:$0xff] }
  0x4c   :  { %369 = vmatpush.bf16.msrb.mxu1 %v1101_v6  ;;  %v838_v6 = vld [vmem:[#allocation8 + $0x58] sm:$0xff] }
  0x4d   :  { %383 = vmatpush.bf16.msrb.mxu2 %v1103_v9  ;;  %v828_v9 = vld [vmem:[#allocation8 + $0x8] sm:$0xff] }
  0x4e   :  { %397 = vmatpush.bf16.msrb.mxu3 %v1106_v14  ;;  %v835_v14 = vld [vmem:[#allocation8 + $0x40] sm:$0xff] }
  0x4f   :  { %356 = vmatpush.bf16.msrb.mxu0 %v612_v23 }
  0x50   :  { %370 = vmatpush.bf16.msrb.mxu1 %v676_v24 }
  0x51   :  { %384 = vmatpush.bf16.msrb.mxu2 %v616_v26 }
  0x52   :  { %398 = vmatpush.bf16.msrb.mxu3 %v680_v31 }
  0x53   :  { %357 = vmatpush.bf16.msrb.mxu0 %v604_v40 }
  0x54   :  { %371 = vmatpush.bf16.msrb.mxu1 %v668_v43  ;;  %v857_v43 = vld [vmem:[%s1149_s4] ss:$0 sm:$0xff] }
  0x55   :  { %385 = vmatpush.bf16.msrb.mxu2 %v608_v47 }
  0x56   :  { %399 = vmatpush.bf16.msrb.mxu3 %v672_v51 }
  0x57   :  { %540 = vmatpush.bf16.msra.mxu0 %v834_v3 }
  0x58   :  { %554 = vmatpush.bf16.msra.mxu1 %v842_v7 }
  0x5b   :  { %541 = vmatpush.bf16.msra.mxu0 %v833_v8 }
  0x5c   :  { %555 = vmatpush.bf16.msra.mxu1 %v841_v12 }
  0x5f   :  { %542 = vmatpush.bf16.msra.mxu0 %v832_v16 }
  0x60   :  { %556 = vmatpush.bf16.msra.mxu1 %v840_v1 }
  0x63   :  { %543 = vmatpush.bf16.msra.mxu0 %v831_v0 }
  0x64   :  { %557 = vmatpush.bf16.msra.mxu1 %v839_v4 }
  0x67   :  { %544 = vmatpush.bf16.msra.mxu0 %v830_v2 }
  0x68   :  { %558 = vmatpush.bf16.msra.mxu1 %v838_v6 }
  0x6b   :  { %545 = vmatpush.bf16.msra.mxu0 %v829_v5 }
  0x6c   :  { %559 = vmatpush.bf16.msra.mxu1 %v837_v10 }
  0x6f   :  { %546 = vmatpush.bf16.msra.mxu0 %v828_v9 }
  0x70   :  { %560 = vmatpush.bf16.msra.mxu1 %v836_v13 }
  0x73   :  { %547 = vmatpush.bf16.msra.mxu0 %v827_v11 }
  0x74   :  { %561 = vmatpush.bf16.msra.mxu1 %v835_v14 }
  0xb3   :  { %v301_v21 = vpop.f32.mrf.mxu0 }
  0xb4   :  { %v315_v25 = vpop.f32.mrf.mxu1  ;;  %v302_v33 = vadd.f32 %v301_v21, %v118_v29 }
  0xb6   :  { %v316_v54 = vadd.f32 %v315_v25, %v302_v33 }
  0xbb   :  { %v329_v34 = vpop.f32.mrf.mxu2  ;;  %v303_v44 = vpop.f32.mrf.mxu0 }
  0xbc   :  { %v343_v38 = vpop.f32.mrf.mxu3  ;;  %v304_v45 = vadd.f32 %v303_v44, %v118_v29  ;;  %v317_v50 = vpop.f32.mrf.mxu1  ;;  %v330_v57 = vadd.f32 %v329_v34, %v119_v46 }
  0xbe   :  { %v318_v55 = vadd.f32 %v317_v50, %v304_v45  ;;  %v344_v61 = vadd.f32 %v343_v38, %v330_v57 }
  0xc0   :  { %v348_v56 = vpack.c.bf16 %v318_v55, %v316_v54 }
  0xc2   :  { %358 = vmatmul.bf16.vlgmr.msrb.gmra.mxu0 %v348_v56  ;;  %386 = vmatmul.bf16.vlgmr.msrb.gmra.mxu2 %v348_v56 }
  0xc3   :  { %v331_v58 = vpop.f32.mrf.mxu2 }
  0xc4   :  { %v332_v59 = vadd.f32 %v331_v58, %v119_v46  ;;  %v345_v60 = vpop.f32.mrf.mxu3 }
  0xc6   :  { %v346_v62 = vadd.f32 %v345_v60, %v332_v59 }
  0xc8   :  { %v349_v63 = vpack.c.bf16 %v346_v62, %v344_v61 }
  0xca   :  { %372 = vmatmul.bf16.vlgmr.msrb.gmra.mxu1 %v349_v63  ;;  %400 = vmatmul.bf16.vlgmr.msrb.gmra.mxu3 %v349_v63 }
 0x13f   :  { %v359_v15 = vpop.f32.mrf.mxu0 }
 0x140   :  { %v360_v23 = vadd.f32 %v359_v15, %v118_v29 }
 0x145   :  { %v387_v19 = vpop.f32.mrf.mxu2 }
 0x146   :  { %v388_v32 = vadd.f32 %v387_v19, %v119_v46 }
 0x147   :  { %v373_v18 = vpop.f32.mrf.mxu1  ;;  %v361_v20 = vpop.f32.mrf.mxu0 }
 0x148   :  { %v362_v24 = vadd.f32 %v361_v20, %v118_v29  ;;  %v374_v27 = vadd.f32 %v373_v18, %v360_v23 }
 0x14d   :  { %v401_v22 = vpop.f32.mrf.mxu3  ;;  %v389_v30 = vpop.f32.mrf.mxu2 }
 0x14e   :  { %v390_v35 = vadd.f32 %v389_v30, %v119_v46  ;;  %v402_v37 = vadd.f32 %v401_v22, %v388_v32 }
 0x14f   :  { %v375_v26 = vpop.f32.mrf.mxu1 }
 0x150   :  { %v376_v28 = vadd.f32 %v375_v26, %v362_v24 }
 0x152   :  { %v406_v31 = vpack.c.bf16 %v376_v28, %v374_v27 }
 0x154   :  { %548 = vmatmul.bf16.vlgmr.msra.gmra.mxu0 %v406_v31 }
 0x155   :  { %v403_v36 = vpop.f32.mrf.mxu3 }
 0x156   :  { %v404_v39 = vadd.f32 %v403_v36, %v390_v35 }
 0x158   :  { %v407_v40 = vpack.c.bf16 %v404_v39, %v402_v37 }
 0x15a   :  { %562 = vmatmul.bf16.vlgmr.msra.gmra.mxu1 %v407_v40 }
 0x1d1   :  { %v549_v41 = vpop.f32.mrf.mxu0 }
 0x1d2   :  { %v550_v48 = vadd.f32 %v857_v43, %v549_v41 }
 0x1d7   :  { %v563_v42 = vpop.f32.mrf.mxu1 }
 0x1d8   :  { %v564_v52 = vadd.f32 %v563_v42, %v550_v48 }
 0x1d9   :  { %v551_v47 = vpop.f32.mrf.mxu0 }
 0x1da   :  { %v552_v49 = vadd.f32 %v857_v43, %v551_v47 }
 0x1df   :  { %v565_v51 = vpop.f32.mrf.mxu1 }
 0x1e0   :  { %v566_v53 = vadd.f32 %v565_v51, %v552_v49 }
 0x1e2   :  { %v846_v3 = vpack.c.bf16 %v566_v53, %v564_v52 }
 0x1e4   :  { %847 = vst [vmem:[#allocation10] sm:$0xff] %v846_v3  }
 0x1e5   :  { %584 = dma.vmem_to_hbm [thread:$0]  %s577_s16, 128, %s579_s19, [#allocation4], %s992_s13, %s992_s13, %s993_s14  }
 0x1e6   :  { %984 = dma.done.wait [#allocation4], 128  }
 0x1e7   :  { %985 = vsyncadd [#allocation4], 4294967168 }
 0x1e8   :  { %589 = vsyncpa [#allocation3], 1 }
 0x1e9   :  { %590 = vsyncpa [#allocation6], 1 }
 0x1ea   :  { %591 = vsyncpa [#allocation9], 1 }
 0x1eb   :  { %592 = vsyncpa [#allocation4], 1 }

</bundles_post_ra>
